<compile_context>
chip_gen: v7x
topology: tpu7x:2x2x1
jax: 0.10.0
libtpu: 0.0.40
codegen_flags: <defaults>
</compile_context>

<pallas_src>
import functools

import jax
import jax.numpy as jnp
from jax.experimental import pallas as pl
from jax.experimental.pallas import tpu as pltpu


def _feature_expander_kernel(x_ref, wfc_t_ref, wconv_ref, btot_ref, o_ref, *,
                             block_b, C, oc_c):
    # x_ref:     (block_b*C, flat_in)       batch folded into the matmul M dim
    # wfc_t_ref: (flat_in, flat_out)        fc weight, pre-transposed (grid-invariant)
    # wconv_ref: (oc_c, C)                  1x1-conv weight (grid-invariant)
    # btot_ref:  (oc_c, flat_out)           fused fc+conv bias (grid-invariant)
    # o_ref:     (block_b*oc_c, flat_out)   lane-dense, sublane-aligned output slab
    flat_out = o_ref.shape[-1]

    # (1) One big MXU matmul for all block_b*C rows at once (f32 accumulation).
    y1 = jnp.dot(x_ref[...], wfc_t_ref[...], preferred_element_type=jnp.float32)
    y1 = y1.reshape(block_b, C, flat_out)            # contiguous split of the M dim

    # (2) Tiny K=C channel mix stays on the VPU: C static broadcast multiply-adds.
    wc = wconv_ref[...].astype(jnp.float32)          # (oc_c, C)
    acc = wc[:, 0:1][None, :, :] * y1[:, 0:1, :]     # (block_b, oc_c, flat_out)
    for c in range(1, C):                            # static unroll, C is small
        acc = acc + wc[:, c:c + 1][None, :, :] * y1[:, c:c + 1, :]
    y2 = acc + btot_ref[...].astype(jnp.float32)[None, :, :]

    # (3) Single unmasked store of the whole (block_b*oc_c, flat_out) slab.
    o_ref[...] = y2.reshape(block_b * oc_c, flat_out).astype(o_ref.dtype)


def _pick_block_b(B, C, oc_c, max_rows=1024):
    """Largest divisor of B s.t. block_b*C is a multiple of 8 (sublane aligned) and the
    per-step row count stays modest. Falls back to the whole batch (always layout-legal)."""
    cap = max(1, max_rows // max(C, oc_c, 1))
    best = None
    for cand in range(1, min(B, cap) + 1):
        if B % cand == 0 and (cand * C) % 8 == 0:
            best = cand
    if best is None:
        best = B
    return best


def feature_expander(x, w_fc, b_fc, w_conv, b_conv, *, out_ch, compute_dtype=None):
    """x: (B, C, H, W). Returns (B*out_ch, C, flat_out, 1), matching the PyTorch module."""
    B, C, H, W = x.shape
    flat_in = H * W
    flat_out, flat_in_w = w_fc.shape
    assert flat_in_w == flat_in
    oc_c = out_ch * C
    assert w_conv.shape == (oc_c, C, 1)

    out_dtype = x.dtype
    if compute_dtype is None:
        # Set compute_dtype=jnp.bfloat16 on v6e/v7x for ~2x MXU rate (f32 accumulation kept).
        compute_dtype = x.dtype

    # nn.Flatten(start_dim=2), then fold batch into the matmul M dimension.
    x_2d = x.reshape(B * C, flat_in).astype(compute_dtype)
    w_fc_t = w_fc.T.astype(compute_dtype)                        # (flat_in, flat_out)
    w_conv_2d = w_conv[:, :, 0].astype(jnp.float32)              # (oc_c, C)
    # Fused bias: Wconv @ (.. + bfc) + bconv == .. + (rowsum(Wconv)*bfc + bconv)
    b_total = (w_conv_2d.sum(axis=1, keepdims=True) * b_fc[None, :].astype(jnp.float32)
               + b_conv[:, None].astype(jnp.float32))            # (oc_c, flat_out)

    block_b = _pick_block_b(B, C, oc_c)
    grid_b = B // block_b

    kernel = functools.partial(_feature_expander_kernel,
                               block_b=block_b, C=C, oc_c=oc_c)

    out = pl.pallas_call(
        kernel,
        out_shape=jax.ShapeDtypeStruct((B * oc_c, flat_out), out_dtype),
        grid_spec=pltpu.PrefetchScalarGridSpec(
            num_scalar_prefetch=0,
            grid=(grid_b,),
            in_specs=[
                pl.BlockSpec((block_b * C, flat_in), lambda i: (i, 0)),
                pl.BlockSpec((flat_in, flat_out), lambda i: (0, 0)),
                pl.BlockSpec((oc_c, C), lambda i: (0, 0)),
                pl.BlockSpec((oc_c, flat_out), lambda i: (0, 0)),
            ],
            out_specs=pl.BlockSpec((block_b * oc_c, flat_out), lambda i: (i, 0)),
        ),
        compiler_params=pltpu.CompilerParams(
            dimension_semantics=("parallel",),
        ),
    )(x_2d, w_fc_t, w_conv_2d, b_total)

    # TODO(synk): for very large flat_in/flat_out add a K-reduction grid axis + f32 VMEM
    # accumulator so per-step weight tiles stay inside v7x's 64 MiB VMEM.

    # PyTorch: x.view(B * out_ch, in_ch, flat_out, 1)  (pure reshape glue)
    return out.reshape(B * out_ch, C, flat_out, 1)


if __name__ == "__main__":
    # Small shapes consistent with the module.
    B, in_ch, H, W = 2, 4, 16, 16
    flat_in = H * W          # 256
    flat_out = 128
    out_ch = 3

    key = jax.random.PRNGKey(0)
    k_x, k_wfc, k_bfc, k_wc, k_bc = jax.random.split(key, 5)

    x = jax.random.normal(k_x, (B, in_ch, H, W), dtype=jnp.float32)

    # Deterministic synthetic parameters (shapes match nn.Linear / nn.Conv1d).
    w_fc = jax.random.normal(k_wfc, (flat_out, flat_in), dtype=jnp.float32) * 0.05
    b_fc = jax.random.normal(k_bfc, (flat_out,), dtype=jnp.float32) * 0.05
    w_conv = jax.random.normal(k_wc, (out_ch * in_ch, in_ch, 1), dtype=jnp.float32) * 0.1
    b_conv = jax.random.normal(k_bc, (out_ch * in_ch,), dtype=jnp.float32) * 0.1

    out = feature_expander(x, w_fc, b_fc, w_conv, b_conv, out_ch=out_ch)
    out = jax.block_until_ready(out)

    # Reference in plain JAX to sanity-check semantics.
    x_f = x.reshape(B, in_ch, flat_in)
    y1 = jnp.einsum("bck,fk->bcf", x_f, w_fc) + b_fc[None, None, :]
    y2 = jnp.einsum("oc,bcf->bof", w_conv[:, :, 0], y1) + b_conv[None, :, None]
    ref = y2.reshape(B * out_ch, in_ch, flat_out, 1)

    assert out.shape == (B * out_ch, in_ch, flat_out, 1), out.shape
    assert jnp.allclose(out, ref, atol=2e-4, rtol=2e-4)
    print("KERNEL_OK")
</pallas_src>

<mosaic_0001>
module attributes {stable_mosaic.version = 11 : i64} {
  func.func @_feature_expander_kernel(%arg0: i32, %arg1: memref<8x256xf32, #tpu.memory_space<vmem>>, %arg2: memref<256x128xf32, #tpu.memory_space<vmem>>, %arg3: memref<12x4xf32, #tpu.memory_space<vmem>>, %arg4: memref<12x128xf32, #tpu.memory_space<vmem>>, %arg5: memref<24x128xf32, #tpu.memory_space<vmem>>) attributes {dimension_semantics = [#tpu.dimension_semantics<parallel>], iteration_bounds = array<i64: 1>, scalar_prefetch = 0 : i64, scratch_operands = 0 : i64, tpu.core_type = #tpu.core_type<tc>, window_params = [{transform_indices = @transform_0, window_bounds = array<i64: 8, 256>}, {pipeline_mode = #tpu.pipeline_mode<synchronous>, transform_indices = @transform_1, window_bounds = array<i64: 256, 128>}, {pipeline_mode = #tpu.pipeline_mode<synchronous>, transform_indices = @transform_2, window_bounds = array<i64: 12, 4>}, {pipeline_mode = #tpu.pipeline_mode<synchronous>, transform_indices = @transform_3, window_bounds = array<i64: 12, 128>}, {transform_indices = @transform_4, window_bounds = array<i64: 24, 128>}]} {
    %c0 = arith.constant 0 : index
    %c0_0 = arith.constant 0 : index
    %0 = vector.load %arg1[%c0, %c0_0] : memref<8x256xf32, #tpu.memory_space<vmem>>, vector<8x256xf32>
    %c0_1 = arith.constant 0 : index
    %c0_2 = arith.constant 0 : index
    %1 = vector.load %arg2[%c0_1, %c0_2] : memref<256x128xf32, #tpu.memory_space<vmem>>, vector<256x128xf32>
    %cst = arith.constant dense<0.000000e+00> : vector<8x128xf32>
    %2 = tpu.matmul %0, %1, %cst {dimension_numbers = #tpu.dot_dimension_numbers<[1], [0], [0], [1], [0, 0, 1, 1], [], []>} : vector<8x256xf32>, vector<256x128xf32>, vector<8x128xf32> -> vector<8x128xf32>
    %3 = vector.shape_cast %2 : vector<8x128xf32> to vector<2x4x128xf32>
    %c0_3 = arith.constant 0 : index
    %c0_4 = arith.constant 0 : index
    %4 = vector.load %arg3[%c0_3, %c0_4] : memref<12x4xf32, #tpu.memory_space<vmem>>, vector<12x4xf32>
    %5 = vector.extract_strided_slice %4 {offsets = [0, 0], sizes = [12, 1], strides = [1, 1]} : vector<12x4xf32> to vector<12x1xf32>
    %6 = vector.shape_cast %5 : vector<12x1xf32> to vector<1x12x1xf32>
    %7 = vector.extract_strided_slice %3 {offsets = [0, 0, 0], sizes = [2, 1, 128], strides = [1, 1, 1]} : vector<2x4x128xf32> to vector<2x1x128xf32>
    %8 = vector.broadcast %6 : vector<1x12x1xf32> to vector<2x12x128xf32>
    %9 = vector.broadcast %7 : vector<2x1x128xf32> to vector<2x12x128xf32>
    %10 = arith.mulf %8, %9 : vector<2x12x128xf32>
    %11 = vector.extract_strided_slice %4 {offsets = [0, 1], sizes = [12, 1], strides = [1, 1]} : vector<12x4xf32> to vector<12x1xf32>
    %12 = vector.shape_cast %11 : vector<12x1xf32> to vector<1x12x1xf32>
    %13 = vector.extract_strided_slice %3 {offsets = [0, 1, 0], sizes = [2, 1, 128], strides = [1, 1, 1]} : vector<2x4x128xf32> to vector<2x1x128xf32>
    %14 = vector.broadcast %12 : vector<1x12x1xf32> to vector<2x12x128xf32>
    %15 = vector.broadcast %13 : vector<2x1x128xf32> to vector<2x12x128xf32>
    %16 = arith.mulf %14, %15 : vector<2x12x128xf32>
    %17 = arith.addf %10, %16 : vector<2x12x128xf32>
    %18 = vector.extract_strided_slice %4 {offsets = [0, 2], sizes = [12, 1], strides = [1, 1]} : vector<12x4xf32> to vector<12x1xf32>
    %19 = vector.shape_cast %18 : vector<12x1xf32> to vector<1x12x1xf32>
    %20 = vector.extract_strided_slice %3 {offsets = [0, 2, 0], sizes = [2, 1, 128], strides = [1, 1, 1]} : vector<2x4x128xf32> to vector<2x1x128xf32>
    %21 = vector.broadcast %19 : vector<1x12x1xf32> to vector<2x12x128xf32>
    %22 = vector.broadcast %20 : vector<2x1x128xf32> to vector<2x12x128xf32>
    %23 = arith.mulf %21, %22 : vector<2x12x128xf32>
    %24 = arith.addf %17, %23 : vector<2x12x128xf32>
    %25 = vector.extract_strided_slice %4 {offsets = [0, 3], sizes = [12, 1], strides = [1, 1]} : vector<12x4xf32> to vector<12x1xf32>
    %26 = vector.shape_cast %25 : vector<12x1xf32> to vector<1x12x1xf32>
    %27 = vector.extract_strided_slice %3 {offsets = [0, 3, 0], sizes = [2, 1, 128], strides = [1, 1, 1]} : vector<2x4x128xf32> to vector<2x1x128xf32>
    %28 = vector.broadcast %26 : vector<1x12x1xf32> to vector<2x12x128xf32>
    %29 = vector.broadcast %27 : vector<2x1x128xf32> to vector<2x12x128xf32>
    %30 = arith.mulf %28, %29 : vector<2x12x128xf32>
    %31 = arith.addf %24, %30 : vector<2x12x128xf32>
    %c0_5 = arith.constant 0 : index
    %c0_6 = arith.constant 0 : index
    %32 = vector.load %arg4[%c0_5, %c0_6] : memref<12x128xf32, #tpu.memory_space<vmem>>, vector<12x128xf32>
    %33 = vector.shape_cast %32 : vector<12x128xf32> to vector<1x12x128xf32>
    %34 = vector.broadcast %33 : vector<1x12x128xf32> to vector<2x12x128xf32>
    %35 = arith.addf %31, %34 : vector<2x12x128xf32>
    %36 = vector.shape_cast %35 : vector<2x12x128xf32> to vector<24x128xf32>
    %c0_7 = arith.constant 0 : index
    %c0_8 = arith.constant 0 : index
    %37 = vector.load %arg5[%c0_7, %c0_8] : memref<24x128xf32, #tpu.memory_space<vmem>>, vector<24x128xf32>
    tpu.vector_store %arg5[%c0_7, %c0_8], %36 {strides = array<i32>} : memref<24x128xf32, #tpu.memory_space<vmem>>, vector<24x128xf32>,
    return
  }
  func.func @transform_0(%arg0: i32) -> (i32, i32) {
    %c0_i32 = arith.constant 0 : i32
    %c0_i32_0 = arith.constant 0 : i32
    return %arg0, %c0_i32 : i32, i32
  }
  func.func @transform_1(%arg0: i32) -> (i32, i32) {
    %c0_i32 = arith.constant 0 : i32
    %c0_i32_0 = arith.constant 0 : i32
    %c0_i32_1 = arith.constant 0 : i32
    return %c0_i32, %c0_i32_0 : i32, i32
  }
  func.func @transform_2(%arg0: i32) -> (i32, i32) {
    %c0_i32 = arith.constant 0 : i32
    %c0_i32_0 = arith.constant 0 : i32
    %c0_i32_1 = arith.constant 0 : i32
    return %c0_i32, %c0_i32_0 : i32, i32
  }
  func.func @transform_3(%arg0: i32) -> (i32, i32) {
    %c0_i32 = arith.constant 0 : i32
    %c0_i32_0 = arith.constant 0 : i32
    %c0_i32_1 = arith.constant 0 : i32
    return %c0_i32, %c0_i32_0 : i32, i32
  }
  func.func @transform_4(%arg0: i32) -> (i32, i32) {
    %c0_i32 = arith.constant 0 : i32
    %c0_i32_0 = arith.constant 0 : i32
    return %arg0, %c0_i32 : i32, i32
  }
}

</mosaic_0001>

<bundles_post_ra>
// kernel: tpu_custom_call.1
= control target key start
LH: loop header
LB: loop body
LE: loop exit
PB: predicated region body
PF: predicated region fallthrough
CT: control target
= control target key end

     0   :  { %9 = vsyncpa [#allocation3], 0  ;;  %s535_s0 = inlined_call_operand.vmem [shape: f32[8,256], index: 0, kind: input, shape index: {}]   ;;  %s536_s1 = inlined_call_operand.hbm [shape: f32[256,128], index: 1, kind: input, shape index: {}]   ;;  %s537_s2 = inlined_call_operand.vmem [shape: f32[12,4], index: 2, kind: input, shape index: {}]   ;;  %s538_s3 = inlined_call_operand.hbm [shape: f32[12,128], index: 3, kind: input, shape index: {}]   ;;  %s539_s4 = inlined_call_operand.hbm [shape: f32[24,128], index: 4, kind: output, shape index: {}]  }
   0x1   :  { %10 = vsyncpa [#allocation6], 0 }
   0x2   :  { %11 = vsyncpa [#allocation4], 0  ;;  %s444_s15 = smov [#allocation2]   ;;  %s372_s19 = scalar_lea.hbm %s536_s1, 4096 }
   0x3   :  { %s19_s16 = sshll.u32 %s444_s15, 4  ;;  %p373_p0 = scmp.ne.s32.totalorder %s536_s1, %s372_s19  ;;  %s20_s16 = int_to_ptr.vmem [resolvable:$true] %s19_s16 }
   0x4   :  { %p376_p1 = scmp.lt.u32.totalorder %s372_s19, %s536_s1 }
   0x6   :  { %p378_p2 = pnand %p376_p1, %p373_p0 }
   0x8   :  { %381 = shalt.err (!%p378_p2)
}
   0x9   :  { %s382_s24 = scalar_lea.vmem %s20_s16, 4096  ;;  %p387_p4 = scmp.lt.s32.totalorder %s20_s16, %s20_s16 }
   0xa   :  { %p383_p3 = scmp.ne.s32.totalorder %s20_s16, %s382_s24  ;;  %p388_p5 = scmp.lt.s32.totalorder %s382_s24, %s382_s24 }
   0xc   :  { %p389_p6 = por %p388_p5, %p387_p4 }
   0xe   :  { %p390_p7 = pnand %p389_p6, %p383_p3 }
  0x10   :  { %393 = shalt.err (!%p390_p7)
}
  0x11   :  { %s445_s25 = smov 128   ;;  %s446_s26 = smov 8  }
  0x12   :  { %25 = dma.hbm_to_vmem [thread:$0]  %s536_s1, 4096, %s20_s16, [#allocation3], %s445_s25, %s445_s25, %s446_s26  }
  0x13   :  { %s447_s29 = smov [#allocation5]   ;;  %s394_s7 = scalar_lea.hbm %s538_s3, 256 }
  0x14   :  { %s33_s30 = sshll.u32 %s447_s29, 4  ;;  %p395_p8 = scmp.ne.s32.totalorder %s538_s3, %s394_s7  ;;  %s34_s30 = int_to_ptr.vmem [resolvable:$true] %s33_s30 }
  0x15   :  { %p398_p9 = scmp.lt.u32.totalorder %s394_s7, %s538_s3 }
  0x17   :  { %p400_p10 = pnand %p398_p9, %p395_p8 }
  0x19   :  { %403 = shalt.err (!%p400_p10)
}
  0x1a   :  { %s404_s12 = scalar_lea.vmem %s34_s30, 256  ;;  %p409_p12 = scmp.lt.s32.totalorder %s34_s30, %s34_s30 }
  0x1b   :  { %p405_p11 = scmp.ne.s32.totalorder %s34_s30, %s404_s12  ;;  %p410_p13 = scmp.lt.s32.totalorder %s404_s12, %s404_s12 }
  0x1d   :  { %p411_p0 = por %p410_p13, %p409_p12 }
  0x1f   :  { %p412_p1 = pnand %p411_p0, %p405_p11 }
  0x21   :  { %415 = shalt.err (!%p412_p1)
}
  0x22   :  { %39 = dma.hbm_to_vmem [thread:$0]  %s538_s3, 256, %s34_s30, [#allocation6], %s445_s25, %s445_s25, %s446_s26  }
  0x23   :  { %438 = dma.done.wait [#allocation3], 4096  }
  0x24   :  { %439 = vsyncadd [#allocation3], 4294963200 }
  0x25   :  { %440 = dma.done.wait [#allocation6], 256  }
  0x26   :  { %441 = vsyncadd [#allocation6], 4294967040  ;;  %v448_v0 = vmov 0   ;;  %v64_v1 = vld [vmem:[#allocation2 + $0x80] sm:$0xff]  ;;  %v65_v2 = vld [vmem:[#allocation2 + $0x88] sm:$0xff]  ;;  %v449_v36 = vmov 1   ;;  %v165_v58 = vlaneseq }
  0x27   :  { %366 = vset.pattern.permute.xlu1 %v448_v0  ;;  %364 = vset.pattern.permute.xlu0 %v448_v0  ;;  %v48_v3 = vld [vmem:[#allocation2] sm:$0xff]  ;;  %v323_v4 = vpack.c.bf16 %v65_v2, %v64_v1  ;;  %v49_v5 = vld [vmem:[#allocation2 + $0x8] sm:$0xff]  ;;  %v66_v6 = vld [vmem:[#allocation2 + $0x90] sm:$0xff]  ;;  %v450_v46 = vmov 2   ;;  %v451_v53 = vmov 3  }
  0x28   :  { %v67_v7 = vld [vmem:[#allocation2 + $0x98] sm:$0xff]  ;;  %v325_v8 = vpack.c.bf16 %v49_v5, %v48_v3  ;;  %v50_v10 = vld [vmem:[#allocation2 + $0x10] sm:$0xff]  ;;  %v68_v12 = vld [vmem:[#allocation2 + $0xa0] sm:$0xff]  ;;  %v166_v60 = vshrl.u32 %v165_v58, 7 }
  0x29   :  { %v327_v9 = vpack.c.bf16 %v67_v7, %v66_v6  ;;  %v51_v11 = vld [vmem:[#allocation2 + $0x18] sm:$0xff]  ;;  %324 = vmatprep.subr.bf16.mxu0 %v323_v4  ;;  %v69_v13 = vld [vmem:[#allocation2 + $0xa8] sm:$0xff]  ;;  %v52_v16 = vld [vmem:[#allocation2 + $0x20] sm:$0xff] }
  0x2a   :  { %326 = vmatpush3.bf16.msra.mxu0 %v325_v8  ;;  %v329_v14 = vpack.c.bf16 %v51_v11, %v50_v10  ;;  %v331_v15 = vpack.c.bf16 %v69_v13, %v68_v12  ;;  %v53_v17 = vld [vmem:[#allocation2 + $0x28] sm:$0xff]  ;;  %v70_v18 = vld [vmem:[#allocation2 + $0xb0] sm:$0xff]  ;;  %v71_v19 = vld [vmem:[#allocation2 + $0xb8] sm:$0xff]  ;;  %v167_v63 = vsub.s32 0, %v166_v60  ;;  %v187_v0 = vsub.s32 1, %v166_v60 }
  0x2b   :  { %328 = vmatprep.subr.bf16.mxu0 %v327_v9  ;;  %v333_v20 = vpack.c.bf16 %v53_v17, %v52_v16  ;;  %v335_v21 = vpack.c.bf16 %v71_v19, %v70_v18  ;;  %v54_v22 = vld [vmem:[#allocation2 + $0x30] sm:$0xff]  ;;  %v55_v23 = vld [vmem:[#allocation2 + $0x38] sm:$0xff]  ;;  %v72_v24 = vld [vmem:[#allocation2 + $0xc0] sm:$0xff]  ;;  %v211_v4 = vsub.s32 2, %v166_v60  ;;  %v235_v6 = vsub.s32 3, %v166_v60 }
  0x2c   :  { %v73_v25 = vld [vmem:[#allocation2 + $0xc8] sm:$0xff]  ;;  %v153_v28 = vld [vmem:[%s537_s2] sm:$0xff]  ;;  %v337_v29 = vpack.c.bf16 %v55_v23, %v54_v22  ;;  %v74_v33 = vld [vmem:[#allocation2 + $0xd0] sm:$0xff] }
  0x2d   :  { %v47_v26 = vld [vmem:[%s535_s0 + $0x8] sm:$0xff]  ;;  %v339_v30 = vpack.c.bf16 %v73_v25, %v72_v24  ;;  %v56_v31 = vld [vmem:[#allocation2 + $0x40] sm:$0xff]  ;;  %157 = vperm.xlu0 %364, %v153_v28   ;;  %v75_v34 = vld [vmem:[#allocation2 + $0xd8] sm:$0xff] }
  0x2e   :  { %330 = vmatpush3.bf16.msra.mxu0 %v329_v14  ;;  %144 = vmatprep.mubr.f32.mxu0 %v47_v26  ;;  %v154_v27 = vld [vmem:[%s537_s2 + $0x8] sm:$0xf]  ;;  %v343_v37 = vpack.c.bf16 %v75_v34, %v74_v33  ;;  %v58_v38 = vld [vmem:[#allocation2 + $0x50] sm:$0xff]  ;;  %v59_v39 = vld [vmem:[#allocation2 + $0x58] sm:$0xff] }
  0x2f   :  { %332 = vmatprep.subr.bf16.mxu0 %v331_v15  ;;  %162 = vperm.xlu1 %366, %v154_v27   ;;  %v57_v32 = vld [vmem:[#allocation2 + $0x48] sm:$0xff]  ;;  %v76_v40 = vld [vmem:[#allocation2 + $0xe0] sm:$0xff]  ;;  %v345_v42 = vpack.c.bf16 %v59_v39, %v58_v38  ;;  %v78_v47 = vld [vmem:[#allocation2 + $0xf0] sm:$0xff] }
  0x30   :  { %v341_v35 = vpack.c.bf16 %v57_v32, %v56_v31  ;;  %v77_v41 = vld [vmem:[#allocation2 + $0xe8] sm:$0xff]  ;;  %v60_v44 = vld [vmem:[#allocation2 + $0x60] sm:$0xff]  ;;  %v79_v48 = vld [vmem:[#allocation2 + $0xf8] sm:$0xff] }
  0x31   :  { %365 = vset.pattern.permute.xlu0 %v449_v36  ;;  %v347_v43 = vpack.c.bf16 %v77_v41, %v76_v40  ;;  %v61_v45 = vld [vmem:[#allocation2 + $0x68] sm:$0xff]  ;;  %v351_v50 = vpack.c.bf16 %v79_v48, %v78_v47  ;;  %v62_v51 = vld [vmem:[#allocation2 + $0x70] sm:$0xff]  ;;  %v63_v52 = vld [vmem:[#allocation2 + $0x78] sm:$0xff] }
  0x32   :  { %334 = vmatpush3.bf16.msra.mxu0 %v333_v20  ;;  %178 = vperm.xlu0 %365, %v153_v28   ;;  %v349_v49 = vpack.c.bf16 %v61_v45, %v60_v44  ;;  %v353_v54 = vpack.c.bf16 %v63_v52, %v62_v51  ;;  %v46_v55 = vld [vmem:[%s535_s0] sm:$0xff]  ;;  %v250_v44 = vld [vmem:[#allocation5 + $0x8] sm:$0xf]  ;;  %s452_s0 = smov [#allocation7]  }
  0x33   :  { %336 = vmatprep.subr.bf16.mxu0 %v335_v21  ;;  %367 = vset.pattern.permute.xlu1 %v449_v36  ;;  %v249_v39 = vld [vmem:[#allocation5] sm:$0xff]  ;;  %s275_s20 = sshll.u32 %s452_s0, 4  ;;  %s276_s20 = int_to_ptr.vmem [resolvable:$true] %s275_s20 }
  0x34   :  { %182 = vperm.xlu1 %367, %v154_v27   ;;  %s416_s21 = scalar_lea.vmem %s276_s20, 384  ;;  %p421_p3 = scmp.lt.s32.totalorder %s276_s20, %s276_s20 }
  0x35   :  { %p417_p2 = scmp.ne.s32.totalorder %s276_s20, %s416_s21  ;;  %p422_p4 = scmp.lt.s32.totalorder %s416_s21, %s416_s21 }
  0x36   :  { %338 = vmatpush3.bf16.msra.mxu0 %v337_v29  ;;  %369 = vset.pattern.permute.xlu0 %v450_v46 }
  0x37   :  { %340 = vmatprep.subr.bf16.mxu0 %v339_v30  ;;  %206 = vperm.xlu0 %369, %v154_v27   ;;  %p423_p5 = por %p422_p4, %p421_p3 }
  0x38   :  { %368 = vset.pattern.permute.xlu1 %v450_v46 }
  0x39   :  { %202 = vperm.xlu1 %368, %v153_v28   ;;  %p424_p6 = pnand %p423_p5, %p417_p2 }
  0x3a   :  { %342 = vmatpush3.bf16.msra.mxu0 %v341_v35 }
  0x3b   :  { %344 = vmatprep.subr.bf16.mxu0 %v343_v37  ;;  %371 = vset.pattern.permute.xlu0 %v451_v53 }
  0x3d   :  { %370 = vset.pattern.permute.xlu1 %v451_v53 }
  0x3e   :  { %346 = vmatpush3.bf16.msra.mxu0 %v345_v42  ;;  %226 = vperm.xlu1 %370, %v153_v28  }
  0x3f   :  { %348 = vmatprep.subr.bf16.mxu0 %v347_v43 }
  0x42   :  { %350 = vmatpush3.bf16.msra.mxu0 %v349_v49  ;;  %230 = vperm.xlu1 %370, %v154_v27  }
  0x43   :  { %352 = vmatprep.subr.bf16.mxu0 %v351_v50 }
  0x46   :  { %354 = vmatpush3.bf16.msra.mxu0 %v353_v54 }
  0x49   :  { %145 = vmatmul.mubr.f32.vlgmr.msra.gmra.mrb[0].mxu0 %v46_v55 }
  0xac   :  { %v158_v59 = vpop.permute.xlu0 %157 }
  0xae   :  { %v163_v56 = vpop.permute.xlu1 %162 }
  0xb1   :  { %v179_v2 = vpop.permute.xlu0 %178 }
  0xb3   :  { %v183_v57 = vpop.permute.xlu1 %182 }
  0xb6   :  { %v207_v18 = vpop.permute.xlu0 %206 }
  0xb8   :  { %v203_v61 = vpop.permute.xlu1 %202 }
  0xbd   :  { %v227_v5 = vpop.permute.xlu1 %226 }
  0xc1   :  { %v231_v25 = vpop.permute.xlu1 %230 }
 0x11c   :  { %v320_v62 = vpop.f32.mrb[0].mxu0 }
 0x11d   :  { %v321_v1 = vpop.f32.mrb[1].mxu0 }
 0x11e   :  { %v322_v3 = vadd.f32 %v321_v1, %v320_v62 }
 0x120   :  { %v151_v7 = vcombine.high %v322_v3, %v322_v3  ;;  %v168_v8 = vrot.slane %v322_v3, %v167_v63  ;;  %v188_v9 = vrot.slane %v322_v3, %v187_v0  ;;  %v212_v11 = vrot.slane %v322_v3, %v211_v4 }
 0x121   :  { %v236_v16 = vrot.slane %v322_v3, %v235_v6 }
 0x122   :  { %v172_v10 = vrot.slane %v151_v7, %v167_v63  ;;  %v173_v12 = vmul.f32 %v168_v8, %v158_v59  ;;  %v174_v13 = vmul.f32 %v168_v8, %v163_v56  ;;  %v192_v14 = vrot.slane %v151_v7, %v187_v0 }
 0x123   :  { %v193_v15 = vmul.f32 %v188_v9, %v179_v2  ;;  %v240_v17 = vrot.slane %v151_v7, %v235_v6  ;;  %v194_v21 = vmul.f32 %v188_v9, %v183_v57  ;;  %v216_v26 = vrot.slane %v151_v7, %v211_v4 }
 0x124   :  { %v175_v19 = vmul.f32 %v172_v10, %v158_v59  ;;  %v176_v20 = vmul.f32 %v172_v10, %v163_v56  ;;  %v195_v22 = vmul.f32 %v192_v14, %v179_v2  ;;  %v196_v23 = vmul.f32 %v192_v14, %v183_v57 }
 0x125   :  { %v197_v24 = vadd.f32 %v193_v15, %v173_v12  ;;  %v217_v27 = vmul.f32 %v212_v11, %v203_v61  ;;  %v198_v28 = vadd.f32 %v194_v21, %v174_v13  ;;  %v218_v31 = vmul.f32 %v212_v11, %v207_v18 }
 0x126   :  { %v199_v29 = vadd.f32 %v195_v22, %v175_v19  ;;  %v200_v30 = vadd.f32 %v196_v23, %v176_v20  ;;  %v241_v32 = vmul.f32 %v236_v16, %v227_v5  ;;  %v219_v33 = vmul.f32 %v216_v26, %v203_v61 }
 0x127   :  { %v220_v34 = vmul.f32 %v216_v26, %v207_v18  ;;  %v221_v35 = vadd.f32 %v217_v27, %v197_v24  ;;  %v242_v36 = vmul.f32 %v236_v16, %v231_v25  ;;  %v243_v37 = vmul.f32 %v240_v17, %v227_v5 }
 0x128   :  { %v222_v38 = vadd.f32 %v218_v31, %v198_v28  ;;  %v244_v40 = vmul.f32 %v240_v17, %v231_v25  ;;  %v223_v41 = vadd.f32 %v219_v33, %v199_v29 }
 0x129   :  { %v224_v42 = vadd.f32 %v220_v34, %v200_v30  ;;  %v245_v43 = vadd.f32 %v241_v32, %v221_v35 }
 0x12a   :  { %v246_v45 = vadd.f32 %v242_v36, %v222_v38  ;;  %v247_v46 = vadd.f32 %v243_v37, %v223_v41 }
 0x12b   :  { %v248_v47 = vadd.f32 %v244_v40, %v224_v42  ;;  %v251_v48 = vadd.f32 %v249_v39, %v245_v43 }
 0x12c   :  { %v252_v49 = vadd.f32 %v250_v44, %v246_v45  ;;  %v253_v50 = vadd.f32 %v249_v39, %v247_v46 }
 0x12d   :  { %v259_v51 = vcombine.high %v251_v48, %v251_v48  ;;  %v254_v52 = vadd.f32 %v250_v44, %v248_v47 }
 0x12e   :  { %v260_v53 = vcombine.high %v253_v50, %v253_v50  ;;  %v262_v55 = vcombine.low %v252_v49, %v253_v50 }
 0x12f   :  { %v261_v54 = vcombine.low %v251_v48, %v259_v51 }
 0x130   :  { %v263_v56 = vcombine.low %v260_v53, %v254_v52  ;;  %268 = vst [vmem:[#allocation7 + $0x8] sm:$0xff] %v262_v55 }
 0x131   :  { %267 = vst [vmem:[#allocation7] sm:$0xff] %v261_v54 }
 0x132   :  { %269 = vst [vmem:[#allocation7 + $0x10] sm:$0xff] %v263_v56 }
 0x133   :  { %427 = shalt.err (!%p424_p6)
}
 0x134   :  { %s428_s24 = scalar_lea.hbm %s539_s4, 384 }
 0x135   :  { %p429_p7 = scmp.ne.s32.totalorder %s539_s4, %s428_s24  ;;  %p432_p8 = scmp.lt.u32.totalorder %s428_s24, %s539_s4 }
 0x137   :  { %p434_p9 = pnand %p432_p8, %p429_p7 }
 0x139   :  { %437 = shalt.err (!%p434_p9)
}
 0x13a   :  { %281 = dma.vmem_to_hbm [thread:$0]  %s276_s20, 384, %s539_s4, [#allocation4], %s445_s25, %s445_s25, %s446_s26  }
 0x13b   :  { %442 = dma.done.wait [#allocation4], 384  }
 0x13c   :  { %443 = vsyncadd [#allocation4], 4294966912 }
 0x13d   :  { %285 = vsyncpa [#allocation3], 1 }
 0x13e   :  { %286 = vsyncpa [#allocation6], 1 }
 0x13f   :  { %287 = vsyncpa [#allocation4], 1 }

</bundles_post_ra>
